<compile_context>
chip_gen: v6e
topology: v6e:2x2x1
jax: 0.10.0
libtpu: 0.0.40
codegen_flags: <defaults>
</compile_context>

<pallas_src>
import jax
import jax.numpy as jnp
from jax.experimental import pallas as pl
from jax.experimental.pallas import tpu as pltpu

K_PAD = 8     # contraction dim 3 -> 8
H_PAD = 256   # hidden dim 200 -> 256
N_PAD = 128   # output dim 2 -> 128 (lane-dense)


def _mlp_kernel(x_ref, w1_ref, b1_ref, w2_ref, b2_ref, o_ref):
    # x_ref: (TB, 8) bf16, w1_ref: (8, 256) bf16, b1_ref: (1, 256) f32,
    # w2_ref: (256, 128) bf16, b2_ref: (1, 128) f32, o_ref: (TB, 128) f32.
    x = x_ref[...]
    h = jnp.dot(x, w1_ref[...], preferred_element_type=jnp.float32)   # MXU
    h = jnp.maximum(h + b1_ref[...], 0.0)                             # VPU, f32
    y = jnp.dot(h.astype(jnp.bfloat16), w2_ref[...],
                preferred_element_type=jnp.float32)                   # MXU
    o_ref[...] = (y + b2_ref[...]).astype(o_ref.dtype)                # lane-dense store


def _round_up(n, m):
    return ((n + m - 1) // m) * m


def network_forward(x, w1, b1, w2, b2, *, tb=1024):
    """x: (B, 3) f32; w1: (3, 200); b1: (200,); w2: (200, 2); b2: (2,).

    Returns (B, 2) f32 = relu(x @ w1 + b1) @ w2 + b2.
    """
    B = x.shape[0]

    # Batch tile: divisible by 8 (sublane), no larger than the padded batch.
    tb = min(tb, _round_up(B, 8))
    tb = _round_up(tb, 8)
    B_pad = _round_up(B, tb)
    grid = (B_pad // tb,)

    # Zero-pad weights/biases onto native tiles (bf16 for MXU inputs,
    # f32 for bias adds). Padded positions are exactly zero.
    w1p = jnp.zeros((K_PAD, H_PAD), jnp.bfloat16).at[:3, :200].set(
        w1.astype(jnp.bfloat16))
    b1p = jnp.zeros((1, H_PAD), jnp.float32).at[:, :200].set(
        b1.astype(jnp.float32))
    w2p = jnp.zeros((H_PAD, N_PAD), jnp.bfloat16).at[:200, :2].set(
        w2.astype(jnp.bfloat16))
    b2p = jnp.zeros((1, N_PAD), jnp.float32).at[:, :2].set(
        b2.astype(jnp.float32))

    # Zero-pad x to (B_pad, 8) and cast to bf16 (halves streamed HBM bytes).
    xp = jnp.zeros((B_pad, K_PAD), jnp.bfloat16).at[:B, :3].set(
        x.astype(jnp.bfloat16))

    out = pl.pallas_call(
        _mlp_kernel,
        out_shape=jax.ShapeDtypeStruct((B_pad, N_PAD), jnp.float32),
        grid_spec=pl.GridSpec(
            grid=grid,
            in_specs=[
                pl.BlockSpec((tb, K_PAD), lambda i: (i, 0)),      # x: streamed
                pl.BlockSpec((K_PAD, H_PAD), lambda i: (0, 0)),   # w1: pinned
                pl.BlockSpec((1, H_PAD), lambda i: (0, 0)),       # b1: pinned
                pl.BlockSpec((H_PAD, N_PAD), lambda i: (0, 0)),   # w2: pinned
                pl.BlockSpec((1, N_PAD), lambda i: (0, 0)),       # b2: pinned
            ],
            out_specs=pl.BlockSpec((tb, N_PAD), lambda i: (i, 0)),
        ),
        compiler_params=pltpu.CompilerParams(
            dimension_semantics=("parallel",)),   # batch steps independent
    )(xp, w1p, b1p, w2p, b2p)

    return out[:B, :2]


def init_params(key):
    """Deterministic init mirroring nn.Linear's U(-1/sqrt(fan_in), 1/sqrt(fan_in))."""
    k1, k2, k3, k4 = jax.random.split(key, 4)
    bound1 = 1.0 / jnp.sqrt(3.0)
    bound2 = 1.0 / jnp.sqrt(200.0)
    w1 = jax.random.uniform(k1, (3, 200), jnp.float32, -bound1, bound1)
    b1 = jax.random.uniform(k2, (200,), jnp.float32, -bound1, bound1)
    w2 = jax.random.uniform(k3, (200, 2), jnp.float32, -bound2, bound2)
    b2 = jax.random.uniform(k4, (2,), jnp.float32, -bound2, bound2)
    return w1, b1, w2, b2


if __name__ == "__main__":
    key = jax.random.PRNGKey(0)
    k_params, k_x = jax.random.split(key)
    w1, b1, w2, b2 = init_params(k_params)

    # Batch of 3-dim state vectors; 500 is not tile-aligned on purpose so the
    # pad-and-slice path and a 4-step batch grid (tb=128) are both exercised.
    B = 500
    x = jax.random.normal(k_x, (B, 3), jnp.float32)

    out = network_forward(x, w1, b1, w2, b2, tb=128)
    out = jax.block_until_ready(out)
    assert out.shape == (B, 2)

    # Reference 1: same bf16-matmul / f32-accumulate recipe in plain JAX.
    xb, w1b, w2b = (x.astype(jnp.bfloat16), w1.astype(jnp.bfloat16),
                    w2.astype(jnp.bfloat16))
    h_ref = jnp.maximum(
        jnp.dot(xb, w1b, preferred_element_type=jnp.float32) + b1, 0.0)
    ref_bf16 = jnp.dot(h_ref.astype(jnp.bfloat16), w2b,
                       preferred_element_type=jnp.float32) + b2
    assert jnp.allclose(out, ref_bf16, atol=2e-3, rtol=2e-3)

    # Reference 2: full-precision f32 forward (loose tolerance for bf16 inputs).
    ref_f32 = jnp.maximum(x @ w1 + b1, 0.0) @ w2 + b2
    assert jnp.allclose(out, ref_f32, atol=5e-2, rtol=5e-2)

    print("KERNEL_OK")
</pallas_src>

<mosaic_0001>
module attributes {stable_mosaic.version = 11 : i64} {
  func.func @_mlp_kernel(%arg0: i32, %arg1: memref<128x8xbf16, #tpu.memory_space<vmem>>, %arg2: memref<8x256xbf16, #tpu.memory_space<vmem>>, %arg3: memref<1x256xf32, #tpu.memory_space<vmem>>, %arg4: memref<256x128xbf16, #tpu.memory_space<vmem>>, %arg5: memref<1x128xf32, #tpu.memory_space<vmem>>, %arg6: memref<128x128xf32, #tpu.memory_space<vmem>>) attributes {dimension_semantics = [#tpu.dimension_semantics<parallel>], iteration_bounds = array<i64: 4>, scalar_prefetch = 0 : i64, scratch_operands = 0 : i64, tpu.core_type = #tpu.core_type<tc>, window_params = [{transform_indices = @transform_0, window_bounds = array<i64: 128, 8>}, {pipeline_mode = #tpu.pipeline_mode<synchronous>, transform_indices = @transform_1, window_bounds = array<i64: 8, 256>}, {pipeline_mode = #tpu.pipeline_mode<synchronous>, transform_indices = @transform_2, window_bounds = array<i64: 1, 256>}, {pipeline_mode = #tpu.pipeline_mode<synchronous>, transform_indices = @transform_3, window_bounds = array<i64: 256, 128>}, {pipeline_mode = #tpu.pipeline_mode<synchronous>, transform_indices = @transform_4, window_bounds = array<i64: 1, 128>}, {transform_indices = @transform_5, window_bounds = array<i64: 128, 128>}]} {
    %c0 = arith.constant 0 : index
    %c0_0 = arith.constant 0 : index
    %0 = vector.load %arg1[%c0, %c0_0] : memref<128x8xbf16, #tpu.memory_space<vmem>>, vector<128x8xbf16>
    %c0_1 = arith.constant 0 : index
    %c0_2 = arith.constant 0 : index
    %1 = vector.load %arg2[%c0_1, %c0_2] : memref<8x256xbf16, #tpu.memory_space<vmem>>, vector<8x256xbf16>
    %cst = arith.constant dense<0.000000e+00> : vector<128x256xf32>
    %2 = tpu.matmul %0, %1, %cst {dimension_numbers = #tpu.dot_dimension_numbers<[1], [0], [0], [1], [0, 0, 1, 1], [], []>} : vector<128x8xbf16>, vector<8x256xbf16>, vector<128x256xf32> -> vector<128x256xf32>
    %c0_3 = arith.constant 0 : index
    %c0_4 = arith.constant 0 : index
    %3 = vector.load %arg3[%c0_3, %c0_4] : memref<1x256xf32, #tpu.memory_space<vmem>>, vector<1x256xf32>
    %4 = vector.broadcast %3 : vector<1x256xf32> to vector<128x256xf32>
    %5 = arith.addf %2, %4 : vector<128x256xf32>
    %cst_5 = arith.constant 0.000000e+00 : f32
    %6 = vector.broadcast %cst_5 : f32 to vector<128x256xf32>
    %7 = arith.maximumf %5, %6 : vector<128x256xf32>
    %8 = arith.truncf %7 : vector<128x256xf32> to vector<128x256xbf16>
    %c0_6 = arith.constant 0 : index
    %c0_7 = arith.constant 0 : index
    %9 = vector.load %arg4[%c0_6, %c0_7] : memref<256x128xbf16, #tpu.memory_space<vmem>>, vector<256x128xbf16>
    %cst_8 = arith.constant dense<0.000000e+00> : vector<128x128xf32>
    %10 = tpu.matmul %8, %9, %cst_8 {dimension_numbers = #tpu.dot_dimension_numbers<[1], [0], [0], [1], [0, 0, 1, 1], [], []>} : vector<128x256xbf16>, vector<256x128xbf16>, vector<128x128xf32> -> vector<128x128xf32>
    %c0_9 = arith.constant 0 : index
    %c0_10 = arith.constant 0 : index
    %11 = vector.load %arg5[%c0_9, %c0_10] : memref<1x128xf32, #tpu.memory_space<vmem>>, vector<1x128xf32>
    %12 = vector.broadcast %11 : vector<1x128xf32> to vector<128x128xf32>
    %13 = arith.addf %10, %12 : vector<128x128xf32>
    %c0_11 = arith.constant 0 : index
    %c0_12 = arith.constant 0 : index
    %14 = vector.load %arg6[%c0_11, %c0_12] : memref<128x128xf32, #tpu.memory_space<vmem>>, vector<128x128xf32>
    tpu.vector_store %arg6[%c0_11, %c0_12], %13 {strides = array<i32>} : memref<128x128xf32, #tpu.memory_space<vmem>>, vector<128x128xf32>,
    return
  }
  func.func @transform_0(%arg0: i32) -> (i32, i32) {
    %c0_i32 = arith.constant 0 : i32
    %c0_i32_0 = arith.constant 0 : i32
    return %arg0, %c0_i32 : i32, i32
  }
  func.func @transform_1(%arg0: i32) -> (i32, i32) {
    %c0_i32 = arith.constant 0 : i32
    %c0_i32_0 = arith.constant 0 : i32
    %c0_i32_1 = arith.constant 0 : i32
    return %c0_i32, %c0_i32_0 : i32, i32
  }
  func.func @transform_2(%arg0: i32) -> (i32, i32) {
    %c0_i32 = arith.constant 0 : i32
    %c0_i32_0 = arith.constant 0 : i32
    %c0_i32_1 = arith.constant 0 : i32
    return %c0_i32, %c0_i32_0 : i32, i32
  }
  func.func @transform_3(%arg0: i32) -> (i32, i32) {
    %c0_i32 = arith.constant 0 : i32
    %c0_i32_0 = arith.constant 0 : i32
    %c0_i32_1 = arith.constant 0 : i32
    return %c0_i32, %c0_i32_0 : i32, i32
  }
  func.func @transform_4(%arg0: i32) -> (i32, i32) {
    %c0_i32 = arith.constant 0 : i32
    %c0_i32_0 = arith.constant 0 : i32
    %c0_i32_1 = arith.constant 0 : i32
    return %c0_i32, %c0_i32_0 : i32, i32
  }
  func.func @transform_5(%arg0: i32) -> (i32, i32) {
    %c0_i32 = arith.constant 0 : i32
    %c0_i32_0 = arith.constant 0 : i32
    return %arg0, %c0_i32 : i32, i32
  }
}

</mosaic_0001>

<bundles_post_ra>
// kernel: tpu_custom_call.1
= control target key start
LH: loop header
LB: loop body
LE: loop exit
PB: predicated region body
PF: predicated region fallthrough
CT: control target
= control target key end

     0   :  { %10 = vsyncpa [#allocation3], 0  ;;  %s1364_s0 = inlined_call_operand.vmem [shape: bf16[512,8], index: 0, kind: input, shape index: {}]   ;;  %s1365_s1 = inlined_call_operand.vmem [shape: bf16[8,256], index: 1, kind: input, shape index: {}]   ;;  %s1366_s2 = inlined_call_operand.vmem [shape: f32[1,256], index: 2, kind: input, shape index: {}]   ;;  %s1367_s3 = inlined_call_operand.vmem [shape: bf16[256,128], index: 3, kind: input, shape index: {}]   ;;  %s1368_s4 = inlined_call_operand.vmem [shape: f32[1,128], index: 4, kind: input, shape index: {}]   ;;  %s1369_s5 = inlined_call_operand.hbm [shape: f32[512,128], index: 5, kind: output, shape index: {}]  }
   0x1   :  { %12 = vsyncpa [#allocation3 + $0x1], 0  ;;  %s1111_s18 = smov 0   ;;  %s1113_s19 = smov 0  }
   0x2   :  { %s1115_s20 = smov 0   ;;  %s1117_s21 = smov 0  }
   0x3 LB: > { %s1132_s22 = sadd.s32 4294967295, %s1075_s21   ;;  %s818_s23 = sadd.s32 4294967294, %s1075_s21   ;;  %s1075_s21 = sphi %s1117_s21, %s1375_s21   ;;  %s1071_s20 = sphi %s1115_s20, %s1374_s20   ;;  %s1067_s19 = sphi %s1113_s19, %s1373_s19   ;;  %s1063_s18 = sphi %s1111_s18, %s1372_s18  }
   0x4   : > { %s1136_s24 = sadd.s32 1, %s1075_s21   ;;  %s135_s25 = sadd.s32 1, %s1071_s20 }
   0x5   : > { %s132_s26 = ssub.s32 %s1075_s21, %s1136_s24  ;;  %p145_p0 = scmp.ne.s32.totalorder %s1071_s20, %s1067_s19 }
   0x6   : > { %p133_p1 = scmp.eq.s32.totalorder %s132_s26, 0  ;;  %p146_p2 = scmp.eq.s32.totalorder %s1132_s22, 3 }
   0x7   : > { %p151_p3 = scmp.ne.s32.totalorder %s1067_s19, %s1063_s18  ;;  %p152_p4 = scmp.eq.s32.totalorder %s818_s23, 3 }
   0x8   : > { %s1147_s27 = scalar_select %p133_p1, %s1071_s20, %s135_s25  }
   0x9   : > { %p1149_p5 = por %p146_p2, %p145_p0  ;;  %p1153_p6 = por %p152_p4, %p151_p3 }
   0xa   : > { %p821_p7 = scmp.ge.s32.totalorder %s1075_s21, 1  ;;  %p191_p8 = scmp.lt.s32.totalorder %s1075_s21, 5 }
   0xc   : > { %p192_p9 = pnand %p821_p7, %p191_p8 }
   0xd   : > { %s823_s7 = sshll.u32 (!%p192_p9), %s1132_s22, 4  ;;  %s866_s26 = sshll.u32 (!%p192_p9), %s1132_s22, 11 }
   0xe   : > { %195 = sbr.rel (%p192_p9) target bundleno = 505 (0x1f9), region = 40  ;;  %p220_p10 = scmp.lt.s32.totalorder (!%p192_p9), %s823_s7, 63 }
   0xf   : > { %s1078_s9 = smov (!%p192_p9), [#allocation2]  }
  0x10   : > { %s1019_s10 = sshll.u32 (!%p192_p9), %s1078_s9, 4  ;;  %s1020_s10 = int_to_ptr.vmem [resolvable:$false] %s1019_s10 }
  0x11   : > { %s1021_s11 = scalar_lea.vmem (!%p192_p9), %s1020_s10, 4096 }
  0x13   : > { %v243_v0 = vld [vmem:[%s1365_s1] sm:$0xff]  ;;  %vm326_vm0 = vcmask 1043456   ;;  %v999_v1 = vld [vmem:[%s1367_s3 + $0x78] sm:$0xff]   ;;  %v1077_v4 = vmov 0   ;;  %s1377_s7 = smov (!%p220_p10, %s823_s7), 63  ;;  %v1001_v7 = vld [vmem:[%s1367_s3 + $0x70] sm:$0xff]   ;;  %v246_v29 = vlaneseq }
  0x14   : > { %v834_v2 = vcombine.high %v243_v0, %v243_v0  ;;  %v833_v3 = vcombine.low %v243_v0, %v243_v0  ;;  %365 = vmatprep.mubr.bf16.mxu0 %v1077_v4  ;;  %v1000_v5 = vld [vmem:[%s1367_s3 + $0x38] sm:$0xff]   ;;  %931 = vmatprep.subr.bf16.mxu1 %v999_v1  ;;  %s824_s14 = sshll.u32 %s1377_s7, 2  ;;  %v1002_v8 = vld [vmem:[%s1367_s3 + $0x30] sm:$0xff]   ;;  %vm301_vm1 = vcmask 64512   ;;  %v1003_v9 = vld [vmem:[%s1367_s3 + $0x68] sm:$0xff]  }
  0x15   : > { %939 = vmatpush3.bf16.msra.mxu1 %v1000_v5  ;;  %s1178_s25 = scalar_lea.vmem %s1364_s0, %s824_s14  ;;  %v1004_v11 = vld [vmem:[%s1367_s3 + $0x28] sm:$0xff]   ;;  %v1005_v13 = vld [vmem:[%s1367_s3 + $0x60] sm:$0xff]   ;;  %v1007_v15 = vld [vmem:[%s1367_s3 + $0x58] sm:$0xff]   ;;  %v247_v30 = vshrl.u32 %v246_v29, 7  ;;  %s216_s14 = sand.u32 1, %s1067_s19  }
  0x16   : > { %835 = vmatprep.subr.msk.bf16.mxu0 %vm326_vm0, %v834_v2  ;;  %v328_v6 = vsel %vm326_vm0, %v833_v3, 0  ;;  %932 = vmatprep.subr.bf16.mxu1 %v1001_v7  ;;  %v991_v10 = vld [vmem:[%s1178_s25] sm:$0xff]   ;;  %v992_v12 = vld [vmem:[%s1178_s25 + $0x8] sm:$0xff]   ;;  %v993_v16 = vld [vmem:[%s1178_s25 + $0x10] sm:$0xff]   ;;  %s822_s15 = sshll.u32 %s216_s14, 7  ;;  %s1324_s8 = scalar_lea.sflag [#allocation3], %s216_s14 }
  0x17   : > { %348 = vmatpush1.bf16.msra.mxu0 %v328_v6  ;;  %v1006_v14 = vld [vmem:[%s1367_s3 + $0x20] sm:$0xff]   ;;  %v1008_v17 = vld [vmem:[%s1367_s3 + $0x18] sm:$0xff]   ;;  %v996_v20 = vld [vmem:[%s1178_s25 + $0x28] sm:$0xff]   ;;  %v252_v31 = vsub.s32 1, %v247_v30  ;;  %v248_v32 = vsub.s32 0, %v247_v30  ;;  %s1280_s23 = scalar_lea.vmem [#allocation2], %s822_s15 }
  0x18   : > { %867 = vmatprep.subr.bf16.mxu0 %v999_v1  ;;  %v994_v18 = vld [vmem:[%s1178_s25 + $0x18] sm:$0xff]   ;;  %v995_v19 = vld [vmem:[%s1178_s25 + $0x20] sm:$0xff]   ;;  %v997_v21 = vld [vmem:[%s1178_s25 + $0x30] sm:$0xff]   ;;  %s756_s30 = sshll.u32 %s1280_s23, 4  ;;  %s1318_s30 = int_to_ptr.vmem [resolvable:$true] %s756_s30 }
  0x19   : > { %940 = vmatpush3.bf16.msra.mxu1 %v1002_v8  ;;  %v998_v22 = vld [vmem:[%s1178_s25 + $0x38] sm:$0xff]   ;;  %v1009_v23 = vld [vmem:[%s1367_s3 + $0x50] sm:$0xff]   ;;  %v1011_v25 = vld [vmem:[%s1367_s3 + $0x48] sm:$0xff]   ;;  %s1316_s25 = scalar_lea.hbm %s1369_s5, %s866_s26  ;;  %s1015_s22 = scalar_lea.vmem %s1318_s30, 2048 }
  0x1a   : > { %933 = vmatprep.subr.bf16.mxu1 %v1003_v9  ;;  %836 = vmatmul.mubr.msk.bf16.vlgmr.msra.gmra.mxu0 %vm301_vm1, %v991_v10  ;;  %v1010_v24 = vld [vmem:[%s1367_s3 + $0x10] sm:$0xff]   ;;  %v1012_v26 = vld [vmem:[%s1367_s3 + $0x8] sm:$0xff]   ;;  %v1013_v27 = vld [vmem:[%s1367_s3 + $0x40] sm:$0xff]   ;;  %p1016_p11 = scmp.ne.s32.totalorder %s1318_s30, %s1015_s22  ;;  %p1022_p0 = scmp.lt.s32.totalorder %s1318_s30, %s1020_s10 }
  0x1b   : > { %375 = vmatprep.mubr.bf16.mxu0 %v1077_v4  ;;  %868 = vmatpush3.bf16.msra.mxu0 %v1000_v5  ;;  %v1014_v28 = vld [vmem:[%s1367_s3] sm:$0xff]   ;;  %p1023_p1 = scmp.lt.s32.totalorder %s1021_s11, %s1015_s22 }
  0x1c   : > { %869 = vmatprep.subr.bf16.mxu0 %v1001_v7  ;;  %v244_v33 = vld [vmem:[%s1366_s2] sm:$0x3]  ;;  %p1017_p12 = pnand %p1016_p11, %p1149_p5 }
  0x1d   : > { %941 = vmatpush3.bf16.msra.mxu1 %v1004_v11  ;;  %v1235_v35 = vrot.slane %v244_v33, %v252_v31  ;;  %v1237_v36 = vrot.slane %v244_v33, %v248_v32  ;;  %p1024_p2 = por %p1023_p1, %p1022_p0 }
  0x1e   : > { %934 = vmatprep.subr.bf16.mxu1 %v1005_v13  ;;  %p1018_p13 = pneg %p1017_p12 }
  0x1f   : > { %870 = vmatpush3.bf16.msra.mxu0 %v1002_v8 }
  0x20   : > { %871 = vmatprep.subr.bf16.mxu0 %v1003_v9  ;;  %p1025_p3 = pnand %p1024_p2, %p1018_p13 }
  0x21   : > { %942 = vmatpush3.bf16.msra.mxu1 %v1006_v14 }
  0x22   : > { %837 = vmatmul.mubr.msk.bf16.gmra.mxu0 %vm301_vm1, %v992_v12  ;;  %935 = vmatprep.subr.bf16.mxu1 %v1007_v15 }
  0x23   : > { %385 = vmatprep.mubr.bf16.mxu0 %v1077_v4  ;;  %872 = vmatpush3.bf16.msra.mxu0 %v1004_v11 }
  0x24   : > { %873 = vmatprep.subr.bf16.mxu0 %v1005_v13 }
  0x25   : > { %943 = vmatpush3.bf16.msra.mxu1 %v1008_v17 }
  0x26   : > { %936 = vmatprep.subr.bf16.mxu1 %v1009_v23 }
  0x27   : > { %874 = vmatpush3.bf16.msra.mxu0 %v1006_v14 }
  0x28   : > { %875 = vmatprep.subr.bf16.mxu0 %v1007_v15 }
  0x29   : > { %944 = vmatpush3.bf16.msra.mxu1 %v1010_v24 }
  0x2a   : > { %838 = vmatmul.mubr.msk.bf16.gmra.mxu0 %vm301_vm1, %v993_v16  ;;  %937 = vmatprep.subr.bf16.mxu1 %v1011_v25 }
  0x2b   : > { %395 = vmatprep.mubr.bf16.mxu0 %v1077_v4  ;;  %876 = vmatpush3.bf16.msra.mxu0 %v1008_v17 }
  0x2c   : > { %877 = vmatprep.subr.bf16.mxu0 %v1009_v23 }
  0x2d   : > { %945 = vmatpush3.bf16.msra.mxu1 %v1012_v26 }
  0x2e   : > { %938 = vmatprep.subr.bf16.mxu1 %v1013_v27 }
  0x2f   : > { %878 = vmatpush3.bf16.msra.mxu0 %v1010_v24 }
  0x30   : > { %879 = vmatprep.subr.bf16.mxu0 %v1011_v25 }
  0x31   : > { %946 = vmatpush3.bf16.msra.mxu1 %v1014_v28 }
  0x32   : > { %839 = vmatmul.mubr.msk.bf16.gmra.mxu0 %vm301_vm1, %v994_v18 }
  0x33   : > { %405 = vmatprep.mubr.bf16.mxu0 %v1077_v4  ;;  %880 = vmatpush3.bf16.msra.mxu0 %v1012_v26 }
  0x34   : > { %881 = vmatprep.subr.bf16.mxu0 %v1013_v27 }
  0x37   : > { %882 = vmatpush3.bf16.msra.mxu0 %v1014_v28 }
  0x3a   : > { %840 = vmatmul.mubr.msk.bf16.gmra.mxu0 %vm301_vm1, %v995_v19 }
  0x3b   : > { %415 = vmatprep.mubr.bf16.mxu0 %v1077_v4 }
  0x42   : > { %841 = vmatmul.mubr.msk.bf16.gmra.mxu0 %vm301_vm1, %v996_v20 }
  0x43   : > { %425 = vmatprep.mubr.bf16.mxu0 %v1077_v4 }
  0x4a   : > { %842 = vmatmul.mubr.msk.bf16.gmra.mxu0 %vm301_vm1, %v997_v21 }
  0x4b   : > { %435 = vmatprep.mubr.bf16.mxu0 %v1077_v4 }
  0x52   : > { %843 = vmatmul.mubr.msk.bf16.gmra.mxu0 %vm301_vm1, %v998_v22 }
  0xda   : > { %v367_v34 = vpop.f32.mrf.mxu0 }
  0xdb   : > { %v368_v41 = vadd.f32 %v367_v34, %v1237_v36 }
  0xdc   : > { %v369_v37 = vpop.f32.mrf.mxu0 }
  0xdd   : > { %v370_v39 = vadd.f32 %v369_v37, %v1235_v35  ;;  %v446_v48 = vmax.f32 %v368_v41, 0.0 }
  0xde   : > { %v371_v38 = vpop.f32.mrf.mxu0 }
  0xdf   : > { %v372_v40 = vadd.f32 %v371_v38, %v1237_v36  ;;  %v447_v46 = vmax.f32 %v370_v39, 0.0 }
  0xe0   : > { %v373_v42 = vpop.f32.mrf.mxu0 }
  0xe1   : > { %v374_v43 = vadd.f32 %v373_v42, %v1235_v35  ;;  %v448_v44 = vmax.f32 %v372_v40, 0.0 }
  0xe2   : > { %v377_v45 = vpop.f32.mrf.mxu0 }
  0xe3   : > { %v449_v47 = vmax.f32 %v374_v43, 0.0  ;;  %v478_v51 = vpack.c.bf16 %v448_v44, %v446_v48  ;;  %v378_v55 = vadd.f32 %v377_v45, %v1237_v36 }
  0xe4   : > { %v379_v49 = vpop.f32.mrf.mxu0 }
  0xe5   : > { %v479_v50 = vpack.c.bf16 %v449_v47, %v447_v46  ;;  %v380_v53 = vadd.f32 %v379_v49, %v1235_v35  ;;  %v450_v62 = vmax.f32 %v378_v55, 0.0 }
  0xe6   : > { %v381_v52 = vpop.f32.mrf.mxu0 }
  0xe7   : > { %v382_v54 = vadd.f32 %v381_v52, %v1237_v36  ;;  %661 = vmatprep.mubr.bf16.mxu0 %v479_v50  ;;  %v451_v60 = vmax.f32 %v380_v53, 0.0 }
  0xe8   : > { %v383_v56 = vpop.f32.mrf.mxu0  ;;  %662 = vmatmul.mubr.bf16.vlgmr.msra.gmra.mxu0 %v478_v51 }
  0xe9   : > { %v384_v57 = vadd.f32 %v383_v56, %v1235_v35  ;;  %v452_v58 = vmax.f32 %v382_v54, 0.0 }
  0xea   : > { %v387_v59 = vpop.f32.mrf.mxu0 }
  0xeb   : > { %v453_v61 = vmax.f32 %v384_v57, 0.0  ;;  %v480_v1 = vpack.c.bf16 %v452_v58, %v450_v62  ;;  %v388_v5 = vadd.f32 %v387_v59, %v1237_v36 }
  0xec   : > { %v389_v63 = vpop.f32.mrf.mxu0 }
  0xed   : > { %v481_v0 = vpack.c.bf16 %v453_v61, %v451_v60  ;;  %v390_v3 = vadd.f32 %v389_v63, %v1235_v35  ;;  %v454_v12 = vmax.f32 %v388_v5, 0.0 }
  0xee   : > { %v391_v2 = vpop.f32.mrf.mxu0 }
  0xef   : > { %v392_v4 = vadd.f32 %v391_v2, %v1237_v36  ;;  %669 = vmatprep.mubr.bf16.mxu1 %v481_v0  ;;  %v455_v10 = vmax.f32 %v390_v3, 0.0 }
  0xf0   : > { %v393_v6 = vpop.f32.mrf.mxu0  ;;  %670 = vmatmul.mubr.bf16.vlgmr.msra.gmra.mxu1 %v480_v1 }
  0xf1   : > { %v394_v7 = vadd.f32 %v393_v6, %v1235_v35  ;;  %v456_v8 = vmax.f32 %v392_v4, 0.0 }
  0xf2   : > { %v397_v9 = vpop.f32.mrf.mxu0 }
  0xf3   : > { %v457_v11 = vmax.f32 %v394_v7, 0.0  ;;  %v482_v15 = vpack.c.bf16 %v456_v8, %v454_v12  ;;  %v398_v19 = vadd.f32 %v397_v9, %v1237_v36 }
  0xf4   : > { %v399_v13 = vpop.f32.mrf.mxu0 }
  0xf5   : > { %v483_v14 = vpack.c.bf16 %v457_v11, %v455_v10  ;;  %v400_v17 = vadd.f32 %v399_v13, %v1235_v35  ;;  %v458_v26 = vmax.f32 %v398_v19, 0.0 }
  0xf6   : > { %v401_v16 = vpop.f32.mrf.mxu0 }
  0xf7   : > { %v402_v18 = vadd.f32 %v401_v16, %v1237_v36  ;;  %677 = vmatprep.mubr.bf16.mxu1 %v483_v14  ;;  %v459_v24 = vmax.f32 %v400_v17, 0.0 }
  0xf8   : > { %v403_v20 = vpop.f32.mrf.mxu0  ;;  %678 = vmatmul.mubr.bf16.gmra.mxu1 %v482_v15 }
  0xf9   : > { %v404_v21 = vadd.f32 %v403_v20, %v1235_v35  ;;  %v460_v22 = vmax.f32 %v402_v18, 0.0 }
  0xfa   : > { %v407_v23 = vpop.f32.mrf.mxu0 }
  0xfb   : > { %v461_v25 = vmax.f32 %v404_v21, 0.0  ;;  %v484_v29 = vpack.c.bf16 %v460_v22, %v458_v26  ;;  %v408_v33 = vadd.f32 %v407_v23, %v1237_v36 }
  0xfc   : > { %v409_v27 = vpop.f32.mrf.mxu0 }
  0xfd   : > { %v485_v28 = vpack.c.bf16 %v461_v25, %v459_v24  ;;  %v410_v31 = vadd.f32 %v409_v27, %v1235_v35  ;;  %v462_v42 = vmax.f32 %v408_v33, 0.0 }
  0xfe   : > { %v411_v30 = vpop.f32.mrf.mxu0 }
  0xff   : > { %v412_v32 = vadd.f32 %v411_v30, %v1237_v36  ;;  %685 = vmatprep.mubr.bf16.mxu1 %v485_v28  ;;  %v463_v40 = vmax.f32 %v410_v31, 0.0 }
 0x100   : > { %v413_v34 = vpop.f32.mrf.mxu0  ;;  %686 = vmatmul.mubr.bf16.gmra.mxu1 %v484_v29 }
 0x101   : > { %v414_v37 = vadd.f32 %v413_v34, %v1235_v35  ;;  %v464_v38 = vmax.f32 %v412_v32, 0.0 }
 0x102   : > { %v417_v39 = vpop.f32.mrf.mxu0 }
 0x103   : > { %v465_v41 = vmax.f32 %v414_v37, 0.0  ;;  %v486_v45 = vpack.c.bf16 %v464_v38, %v462_v42  ;;  %v418_v49 = vadd.f32 %v417_v39, %v1237_v36 }
 0x104   : > { %v419_v43 = vpop.f32.mrf.mxu0 }
 0x105   : > { %v487_v44 = vpack.c.bf16 %v465_v41, %v463_v40  ;;  %v420_v47 = vadd.f32 %v419_v43, %v1235_v35  ;;  %v466_v56 = vmax.f32 %v418_v49, 0.0 }
 0x106   : > { %v421_v46 = vpop.f32.mrf.mxu0 }
 0x107   : > { %v422_v48 = vadd.f32 %v421_v46, %v1237_v36  ;;  %693 = vmatprep.mubr.bf16.mxu1 %v487_v44  ;;  %v467_v54 = vmax.f32 %v420_v47, 0.0 }
 0x108   : > { %v423_v50 = vpop.f32.mrf.mxu0  ;;  %694 = vmatmul.mubr.bf16.gmra.mxu1 %v486_v45 }
 0x109   : > { %v424_v51 = vadd.f32 %v423_v50, %v1235_v35  ;;  %v468_v52 = vmax.f32 %v422_v48, 0.0 }
 0x10a   : > { %v427_v53 = vpop.f32.mrf.mxu0 }
 0x10b   : > { %v469_v55 = vmax.f32 %v424_v51, 0.0  ;;  %v488_v59 = vpack.c.bf16 %v468_v52, %v466_v56  ;;  %v428_v63 = vadd.f32 %v427_v53, %v1237_v36 }
 0x10c   : > { %v429_v57 = vpop.f32.mrf.mxu0 }
 0x10d   : > { %v489_v58 = vpack.c.bf16 %v469_v55, %v467_v54  ;;  %v430_v61 = vadd.f32 %v429_v57, %v1235_v35  ;;  %v470_v6 = vmax.f32 %v428_v63, 0.0 }
 0x10e   : > { %v431_v60 = vpop.f32.mrf.mxu0 }
 0x10f   : > { %v432_v62 = vadd.f32 %v431_v60, %v1237_v36  ;;  %701 = vmatprep.mubr.bf16.mxu1 %v489_v58  ;;  %v471_v4 = vmax.f32 %v430_v61, 0.0 }
 0x110   : > { %v433_v0 = vpop.f32.mrf.mxu0  ;;  %702 = vmatmul.mubr.bf16.gmra.mxu1 %v488_v59 }
 0x111   : > { %v434_v1 = vadd.f32 %v433_v0, %v1235_v35  ;;  %v472_v2 = vmax.f32 %v432_v62, 0.0 }
 0x112   : > { %v437_v3 = vpop.f32.mrf.mxu0 }
 0x113   : > { %v473_v5 = vmax.f32 %v434_v1, 0.0  ;;  %v490_v9 = vpack.c.bf16 %v472_v2, %v470_v6  ;;  %v438_v13 = vadd.f32 %v437_v3, %v1237_v36 }
 0x114   : > { %v439_v7 = vpop.f32.mrf.mxu0 }
 0x115   : > { %v491_v8 = vpack.c.bf16 %v473_v5, %v471_v4  ;;  %v440_v11 = vadd.f32 %v439_v7, %v1235_v35  ;;  %v474_v19 = vmax.f32 %v438_v13, 0.0 }
 0x116   : > { %v441_v10 = vpop.f32.mrf.mxu0 }
 0x117   : > { %v442_v12 = vadd.f32 %v441_v10, %v1237_v36  ;;  %709 = vmatprep.mubr.bf16.mxu1 %v491_v8  ;;  %v475_v17 = vmax.f32 %v440_v11, 0.0  ;;  %v1277_v36 = vld [vmem:[%s1368_s4] ss:$0 sm:$0xff] }
 0x118   : > { %v443_v14 = vpop.f32.mrf.mxu0  ;;  %710 = vmatmul.mubr.bf16.gmra.mxu1 %v490_v9 }
 0x119   : > { %v444_v15 = vadd.f32 %v443_v14, %v1235_v35  ;;  %v476_v16 = vmax.f32 %v442_v12, 0.0 }
 0x11b   : > { %v477_v18 = vmax.f32 %v444_v15, 0.0  ;;  %v492_v21 = vpack.c.bf16 %v476_v16, %v474_v19 }
 0x11d   : > { %v493_v20 = vpack.c.bf16 %v477_v18, %v475_v17 }
 0x11f   : > { %717 = vmatprep.mubr.bf16.mxu1 %v493_v20 }
 0x120   : > { %718 = vmatmul.mubr.bf16.gmra.mxu1 %v492_v21 }
 0x1a8   : > { %v883_v22 = vpop.f32.mrf.mxu0 }
 0x1aa   : > { %v884_v23 = vpop.f32.mrf.mxu0 }
 0x1ab   : > { %v885_v24 = vadd.f32 %v884_v23, %v883_v22 }
 0x1ac   : > { %v886_v35 = vpop.f32.mrf.mxu0 }
 0x1ad   : > { %v664_v25 = vadd.f32 %v885_v24, %v1277_v36 }
 0x1ae   : > { %v887_v26 = vpop.f32.mrf.mxu0 }
 0x1af   : > { %726 = vst [vmem:[%s1280_s23] sm:$0xff] %v664_v25  ;;  %v888_v27 = vadd.f32 %v887_v26, %v886_v35 }
 0x1b0   : > { %v889_v28 = vpop.f32.mrf.mxu1 }
 0x1b1   : > { %v667_v29 = vadd.f32 %v888_v27, %v1277_v36 }
 0x1b2   : > { %v890_v30 = vpop.f32.mrf.mxu1 }
 0x1b3   : > { %727 = vst [vmem:[%s1280_s23 + $0x8] sm:$0xff] %v667_v29  ;;  %v891_v31 = vadd.f32 %v890_v30, %v889_v28 }
 0x1b4   : > { %v892_v32 = vpop.f32.mrf.mxu1 }
 0x1b5   : > { %v672_v33 = vadd.f32 %v891_v31, %v1277_v36 }
 0x1b6   : > { %v893_v34 = vpop.f32.mrf.mxu1 }
 0x1b7   : > { %728 = vst [vmem:[%s1280_s23 + $0x10] sm:$0xff] %v672_v33  ;;  %v894_v37 = vadd.f32 %v893_v34, %v892_v32 }
 0x1b8   : > { %v895_v38 = vpop.f32.mrf.mxu1 }
 0x1b9   : > { %v675_v39 = vadd.f32 %v894_v37, %v1277_v36 }
 0x1ba   : > { %v896_v40 = vpop.f32.mrf.mxu1 }
 0x1bb   : > { %729 = vst [vmem:[%s1280_s23 + $0x18] sm:$0xff] %v675_v39  ;;  %v897_v41 = vadd.f32 %v896_v40, %v895_v38 }
 0x1bc   : > { %v898_v42 = vpop.f32.mrf.mxu1 }
 0x1bd   : > { %v680_v43 = vadd.f32 %v897_v41, %v1277_v36 }
 0x1be   : > { %v899_v44 = vpop.f32.mrf.mxu1 }
 0x1bf   : > { %730 = vst [vmem:[%s1280_s23 + $0x20] sm:$0xff] %v680_v43  ;;  %v900_v45 = vadd.f32 %v899_v44, %v898_v42 }
 0x1c0   : > { %v901_v46 = vpop.f32.mrf.mxu1 }
 0x1c1   : > { %v683_v47 = vadd.f32 %v900_v45, %v1277_v36 }
 0x1c2   : > { %v902_v48 = vpop.f32.mrf.mxu1 }
 0x1c3   : > { %731 = vst [vmem:[%s1280_s23 + $0x28] sm:$0xff] %v683_v47  ;;  %v903_v49 = vadd.f32 %v902_v48, %v901_v46 }
 0x1c4   : > { %v904_v50 = vpop.f32.mrf.mxu1 }
 0x1c5   : > { %v688_v51 = vadd.f32 %v903_v49, %v1277_v36 }
 0x1c6   : > { %v905_v52 = vpop.f32.mrf.mxu1 }
 0x1c7   : > { %732 = vst [vmem:[%s1280_s23 + $0x30] sm:$0xff] %v688_v51  ;;  %v906_v53 = vadd.f32 %v905_v52, %v904_v50 }
 0x1c8   : > { %v907_v54 = vpop.f32.mrf.mxu1 }
 0x1c9   : > { %v691_v55 = vadd.f32 %v906_v53, %v1277_v36 }
 0x1ca   : > { %v908_v56 = vpop.f32.mrf.mxu1 }
 0x1cb   : > { %733 = vst [vmem:[%s1280_s23 + $0x38] sm:$0xff] %v691_v55  ;;  %v909_v57 = vadd.f32 %v908_v56, %v907_v54 }
 0x1cc   : > { %v910_v58 = vpop.f32.mrf.mxu1 }
 0x1cd   : > { %v696_v59 = vadd.f32 %v909_v57, %v1277_v36 }
 0x1ce   : > { %v911_v60 = vpop.f32.mrf.mxu1 }
 0x1cf   : > { %734 = vst [vmem:[%s1280_s23 + $0x40] sm:$0xff] %v696_v59  ;;  %v912_v61 = vadd.f32 %v911_v60, %v910_v58 }
 0x1d0   : > { %v913_v62 = vpop.f32.mrf.mxu1 }
 0x1d1   : > { %v699_v63 = vadd.f32 %v912_v61, %v1277_v36 }
 0x1d2   : > { %v914_v0 = vpop.f32.mrf.mxu1 }
 0x1d3   : > { %735 = vst [vmem:[%s1280_s23 + $0x48] sm:$0xff] %v699_v63  ;;  %v915_v1 = vadd.f32 %v914_v0, %v913_v62 }
 0x1d4   : > { %v916_v2 = vpop.f32.mrf.mxu1 }
 0x1d5   : > { %v704_v3 = vadd.f32 %v915_v1, %v1277_v36 }
 0x1d6   : > { %v917_v4 = vpop.f32.mrf.mxu1 }
 0x1d7   : > { %736 = vst [vmem:[%s1280_s23 + $0x50] sm:$0xff] %v704_v3  ;;  %v918_v5 = vadd.f32 %v917_v4, %v916_v2 }
 0x1d8   : > { %v919_v6 = vpop.f32.mrf.mxu1 }
 0x1d9   : > { %v707_v7 = vadd.f32 %v918_v5, %v1277_v36 }
 0x1da   : > { %v920_v8 = vpop.f32.mrf.mxu1 }
 0x1db   : > { %737 = vst [vmem:[%s1280_s23 + $0x58] sm:$0xff] %v707_v7  ;;  %v921_v9 = vadd.f32 %v920_v8, %v919_v6 }
 0x1dc   : > { %v922_v10 = vpop.f32.mrf.mxu1 }
 0x1dd   : > { %v712_v11 = vadd.f32 %v921_v9, %v1277_v36 }
 0x1de   : > { %v923_v12 = vpop.f32.mrf.mxu1 }
 0x1df   : > { %738 = vst [vmem:[%s1280_s23 + $0x60] sm:$0xff] %v712_v11  ;;  %v924_v13 = vadd.f32 %v923_v12, %v922_v10 }
 0x1e0   : > { %v925_v14 = vpop.f32.mrf.mxu1 }
 0x1e1   : > { %v715_v15 = vadd.f32 %v924_v13, %v1277_v36 }
 0x1e2   : > { %v926_v16 = vpop.f32.mrf.mxu1 }
 0x1e3   : > { %739 = vst [vmem:[%s1280_s23 + $0x68] sm:$0xff] %v715_v15  ;;  %v927_v17 = vadd.f32 %v926_v16, %v925_v14 }
 0x1e4   : > { %v928_v18 = vpop.f32.mrf.mxu1 }
 0x1e5   : > { %v720_v19 = vadd.f32 %v927_v17, %v1277_v36 }
 0x1e6   : > { %v929_v20 = vpop.f32.mrf.mxu1 }
 0x1e7   : > { %740 = vst [vmem:[%s1280_s23 + $0x70] sm:$0xff] %v720_v19  ;;  %v930_v21 = vadd.f32 %v929_v20, %v928_v18 }
 0x1e9   : > { %v723_v22 = vadd.f32 %v930_v21, %v1277_v36 }
 0x1eb   : > { %741 = vst [vmem:[%s1280_s23 + $0x78] sm:$0xff] %v723_v22 }
 0x1ec   : > { %1028 = shalt.err (!%p1025_p3)
}
 0x1ed   : > { %s1029_s12 = scalar_lea.hbm %s1316_s25, 2048  ;;  %s1033_s15 = scalar_lea.hbm %s1369_s5, 8192 }
 0x1ee   : > { %p1030_p4 = scmp.ne.s32.totalorder %s1316_s25, %s1029_s12  ;;  %p1034_p9 = scmp.lt.s32.totalorder %s1316_s25, %s1369_s5 }
 0x1ef   : > { %p1035_p10 = scmp.lt.s32.totalorder %s1033_s15, %s1029_s12 }
 0x1f0   : > { %p1031_p7 = pnand %p1030_p4, %p1149_p5 }
 0x1f1   : > { %p1036_p11 = por %p1035_p10, %p1034_p9 }
 0x1f2   : > { %p1032_p8 = pneg %p1031_p7 }
 0x1f4   : > { %p1037_p12 = pnand %p1036_p11, %p1032_p8 }
 0x1f6   : > { %1040 = shalt.err (!%p1037_p12)
}
 0x1f7   : > { %s1079_s23 = smov 128   ;;  %s1080_s26 = smov 8  }
 0x1f8   : > { %947 = dma.vmem_to_hbm [thread:$0]  (%p1149_p5), %s1318_s30, 2048, %s1316_s25, %s1324_s8, %s1079_s23, %s1079_s23, %s1080_s26  }
 0x1f9 PF: > { %p953_p13 = scmp.ge.s32.totalorder %s1075_s21, 2  ;;  %s771_s6 = sand.u32 1, %s1063_s18  }
 0x1fa   : > { %s772_s7 = scalar_lea.sflag [#allocation3], %s771_s6 }
 0x1fb   : > { %p950_p0 = pnand %p953_p13, %p1153_p6 }
 0x1fd   : > { %p951_p1 = pneg %p950_p0 }
 0x1ff   : > { %1058 = dma.done.wait (%p951_p1), %s772_s7, 2048  }
 0x200   : > { %1060 = vsyncadd (%p951_p1), %s772_s7, 4294965248  ;;  %p15_p2 = scmp.ge.s32.totalorder %s1136_s24, 6   ;;  %s1372_s18 = smov %s1067_s19 }
 0x201   : > { %s1373_s19 = smov %s1071_s20  ;;  %s1374_s20 = smov %s1147_s27 }
 0x202   : > { %s1375_s21 = smov %s1136_s24  ;;  %17 = sbr.rel (!%p15_p2) target bundleno = 3 (0x3), region = 75 }
 0x207   :  { %777 = vsyncpa [#allocation3], 1 }
 0x208   :  { %779 = vsyncpa [#allocation3 + $0x1], 1 }

</bundles_post_ra>
